<compile_context>
chip_gen: v6e
topology: v6e:2x2x1
jax: 0.10.0
libtpu: 0.0.40
codegen_flags: <defaults>
</compile_context>

<pallas_src>
import jax
import jax.numpy as jnp
from jax.experimental import pallas as pl
from jax.experimental.pallas import tpu as pltpu


def _round_up(x, m):
    return -(-x // m) * m


def _recon_loss_kernel(rec_ref, orig_ref, mask_ref, num_ref, den_ref):
    t = pl.program_id(2)

    # Per-(split, batch) accumulator blocks are resident across the sequential
    # tile axis; zero them on the first tile of each row.
    @pl.when(t == 0)
    def _():
        num_ref[...] = jnp.zeros_like(num_ref)
        den_ref[...] = jnp.zeros_like(den_ref)

    rec = rec_ref[...].astype(jnp.float32)    # (C, TILE)
    orig = orig_ref[...].astype(jnp.float32)  # (C, TILE)
    m = mask_ref[...].astype(jnp.float32)     # (1, TILE)

    diff = rec - orig
    # Reduce over C *before* applying the mask: one (1, TILE) multiply instead
    # of C broadcast multiplies.
    sq_c = jnp.sum(diff * diff, axis=0, keepdims=True)  # (1, TILE)

    num_ref[...] += sq_c * m
    den_ref[...] += m


def _vmem_params():
    """(vmem_limit_bytes, pipeline_budget_bytes) for the local TPU generation."""
    phys = 64 * 1024 * 1024  # conservative default: assume v7x-sized VMEM
    try:
        phys = int(pltpu.get_tpu_info().vmem_capacity_bytes)
    except Exception:
        pass
    if phys <= 64 * 1024 * 1024:
        # v7x: 64 MiB physical per TensorCore -> leave ample compiler headroom.
        return 32 * 1024 * 1024, 8 * 1024 * 1024
    # v5e / v6e: 128 MiB physical.
    return 48 * 1024 * 1024, 16 * 1024 * 1024


def _choose_tiling(hw, b, c, rec_itemsize, mask_itemsize, pipeline_budget,
                   num_cores=2, target_steps_per_core=4):
    """Pick (tile, split, n_tiles_per_split, hw_pad).

    tile is a multiple of 128 chosen so that
      * double-buffered input blocks + the resident f32 accumulators fit the
        pipeline budget (dtype-aware sublane padding),
      * every core gets >= target_steps_per_core grid steps,
      * each step still moves ~>= 1 MiB of HBM traffic where possible.
    """
    def pad_rows(rows, itemsize):
        sub = 8 * max(1, 4 // itemsize)       # 8 (f32) / 16 (bf16) / 32 (int8)
        return _round_up(rows, sub)

    hw128 = _round_up(hw, 128)
    ncols = hw128 // 128
    # Size-2 spatial split keeps both v7x TensorCores busy even when B == 1.
    split = 2 if ncols >= 2 else 1

    # --- VMEM cap on the tile: live bytes per 128-lane column (rec + orig +
    #     sublane-padded mask + two sublane-padded f32 accumulators), x2 for
    #     double buffering.
    bytes_per_lane = (2 * pad_rows(c, rec_itemsize) * rec_itemsize
                      + pad_rows(1, mask_itemsize) * mask_itemsize
                      + 2 * 8 * 4)
    vmem_cap = max(128, (pipeline_budget // (2 * bytes_per_lane)) // 128 * 128)

    # --- Lower bound on the tile from DMA efficiency (~1 MiB per grid step).
    dma_min = _round_up(-(-(1 << 20) // ((2 * c + 1) * rec_itemsize)), 128)

    # --- Number of tiles per batch row: enough grid steps per core, not so
    #     many that per-step DMA collapses, and never a block over the cap.
    steps_floor = -(-(target_steps_per_core * num_cores) // max(1, b))
    n_dma_max = max(split, hw128 // dma_min)
    n = min(steps_floor, n_dma_max)
    n = max(n, -(-hw128 // vmem_cap))   # VMEM budget always wins
    n = max(n, split)
    n = min(n, ncols)
    n = _round_up(n, split)

    tile = _round_up(-(-hw128 // n), 128)
    tile = min(tile, max(vmem_cap, 128))

    n_per_split = max(1, -(-hw128 // (tile * split)))
    hw_pad = tile * split * n_per_split
    return tile, split, n_per_split, hw_pad


@jax.jit
def reconstruction_loss(reconstructed, original, mask):
    """reconstructed, original: (B, C, H, W); mask: (B, H, W). Returns scalar f32."""
    B, C, H, W = reconstructed.shape
    HW = H * W

    vmem_limit, pipeline_budget = _vmem_params()
    tile, split, n_per_split, hw_pad = _choose_tiling(
        HW, B, C, reconstructed.dtype.itemsize, mask.dtype.itemsize,
        pipeline_budget)

    rec = reconstructed.reshape(B, C, HW)
    orig = original.reshape(B, C, HW)
    msk = mask.reshape(B, 1, HW)
    pad = hw_pad - HW
    if pad:
        # Zero padding contributes nothing to either the masked SSE or the
        # mask sum, and keeps every block lane-dense, unmasked and pipelined.
        rec = jnp.pad(rec, ((0, 0), (0, 0), (0, pad)))
        orig = jnp.pad(orig, ((0, 0), (0, 0), (0, pad)))
        msk = jnp.pad(msk, ((0, 0), (0, 0), (0, pad)))

    num_part, den_part = pl.pallas_call(
        _recon_loss_kernel,
        out_shape=(
            jax.ShapeDtypeStruct((split, B, 1, tile), jnp.float32),
            jax.ShapeDtypeStruct((split, B, 1, tile), jnp.float32),
        ),
        grid_spec=pltpu.PrefetchScalarGridSpec(
            num_scalar_prefetch=0,
            # (spatial split, batch, tile); reduction (tile) axis last.
            grid=(split, B, n_per_split),
            in_specs=[
                pl.BlockSpec((None, C, tile),
                             lambda s, b, t: (b, 0, s * n_per_split + t)),
                pl.BlockSpec((None, C, tile),
                             lambda s, b, t: (b, 0, s * n_per_split + t)),
                pl.BlockSpec((None, 1, tile),
                             lambda s, b, t: (b, 0, s * n_per_split + t)),
            ],
            out_specs=(
                pl.BlockSpec((None, None, 1, tile), lambda s, b, t: (s, b, 0, 0)),
                pl.BlockSpec((None, None, 1, tile), lambda s, b, t: (s, b, 0, 0)),
            ),
        ),
        compiler_params=pltpu.CompilerParams(
            # Split and batch axes only touch their own accumulator column, so
            # both are safe to shard across TensorCores; the tile axis is a
            # sequential reduction into the resident output block.
            # TODO(synk): on v7x, confirm "parallel" actually shards the grid
            # across both TensorCores; if not, switch the leading axis to
            # pltpu.CORE_PARALLEL or an explicit core_map split.
            dimension_semantics=("parallel", "parallel", "arbitrary"),
            vmem_limit_bytes=vmem_limit,
        ),
    )(rec, orig, msk)

    num = jnp.sum(num_part)
    den = jnp.sum(den_part)
    return num / jnp.maximum(den, jnp.float32(1.0))


def _reference(reconstructed, original, mask):
    m = mask[:, None, :, :].astype(jnp.float32)
    diff = (reconstructed.astype(jnp.float32) - original.astype(jnp.float32)) ** 2
    return (diff * m).sum() / jnp.maximum(m.sum(), 1.0)


if __name__ == "__main__":
    key = jax.random.PRNGKey(0)
    k1, k2, k3, k4, k5, k6 = jax.random.split(key, 6)

    # --- Primary test: typical (B, C, H, W) usage.
    B, C, H, W = 2, 4, 16, 16
    reconstructed = jax.random.normal(k1, (B, C, H, W), dtype=jnp.float32)
    original = jax.random.normal(k2, (B, C, H, W), dtype=jnp.float32)
    mask = (jax.random.uniform(k3, (B, H, W)) > 0.5).astype(jnp.float32)

    loss = jax.block_until_ready(reconstruction_loss(reconstructed, original, mask))
    ref = _reference(reconstructed, original, mask)
    assert jnp.allclose(loss, ref, rtol=1e-5, atol=1e-5), (loss, ref)

    # --- All-zero mask: exercises the clamp_min(1.0) path (loss == 0).
    zero_mask = jnp.zeros((B, H, W), dtype=jnp.float32)
    loss_z = jax.block_until_ready(reconstruction_loss(reconstructed, original, zero_mask))
    assert jnp.allclose(loss_z, 0.0, atol=1e-6), loss_z

    # --- Non-128-divisible spatial size + B == 1: exercises the wrapper-side
    #     zero-padding path and the size-2 spatial-split (megacore) axis.
    B2, C2, H2, W2 = 1, 3, 17, 17
    rec2 = jax.random.normal(k4, (B2, C2, H2, W2), dtype=jnp.float32)
    org2 = jax.random.normal(k5, (B2, C2, H2, W2), dtype=jnp.float32)
    msk2 = (jax.random.uniform(k6, (B2, H2, W2)) > 0.3).astype(jnp.float32)
    loss2 = jax.block_until_ready(reconstruction_loss(rec2, org2, msk2))
    ref2 = _reference(rec2, org2, msk2)
    assert jnp.allclose(loss2, ref2, rtol=1e-5, atol=1e-5), (loss2, ref2)

    # --- bf16 inputs: exercises dtype-aware VMEM sizing + in-kernel f32 accum.
    rec3 = reconstructed.astype(jnp.bfloat16)
    org3 = original.astype(jnp.bfloat16)
    loss3 = jax.block_until_ready(reconstruction_loss(rec3, org3, mask))
    ref3 = _reference(rec3, org3, mask)
    assert jnp.allclose(loss3, ref3, rtol=1e-4, atol=1e-4), (loss3, ref3)

    print("KERNEL_OK")
</pallas_src>

<mosaic_0001>
module attributes {stable_mosaic.version = 11 : i64} {
  func.func @_recon_loss_kernel(%arg0: i32, %arg1: i32, %arg2: i32, %arg3: memref<1x4x128xf32, #tpu.memory_space<vmem>>, %arg4: memref<1x4x128xf32, #tpu.memory_space<vmem>>, %arg5: memref<1x1x128xf32, #tpu.memory_space<vmem>>, %arg6: memref<1x1x1x128xf32, #tpu.memory_space<vmem>>, %arg7: memref<1x1x1x128xf32, #tpu.memory_space<vmem>>) attributes {dimension_semantics = [#tpu.dimension_semantics<parallel>, #tpu.dimension_semantics<parallel>, #tpu.dimension_semantics<arbitrary>], iteration_bounds = array<i64: 2, 2, 1>, scalar_prefetch = 0 : i64, scratch_operands = 0 : i64, tpu.core_type = #tpu.core_type<tc>, window_params = [{transform_indices = @transform_0, window_bounds = array<i64: 1, 4, 128>}, {transform_indices = @transform_1, window_bounds = array<i64: 1, 4, 128>}, {transform_indices = @transform_2, window_bounds = array<i64: 1, 1, 128>}, {transform_indices = @transform_3, window_bounds = array<i64: 1, 1, 1, 128>}, {transform_indices = @transform_4, window_bounds = array<i64: 1, 1, 1, 128>}]} {
    %c0_i32 = arith.constant 0 : i32
    %0 = arith.cmpi eq, %arg2, %c0_i32 : i32
    %1 = arith.extui %0 : i1 to i32
    %c0_i32_0 = arith.constant 0 : i32
    %2 = arith.cmpi ne, %1, %c0_i32_0 : i32
    scf.if %2 {
      %cst_25 = arith.constant 0.000000e+00 : f32
      %26 = vector.broadcast %cst_25 : f32 to vector<1x128xf32>
      %c0_26 = arith.constant 0 : index
      %c0_27 = arith.constant 0 : index
      %c0_28 = arith.constant 0 : index
      %c0_29 = arith.constant 0 : index
      %27 = vector.load %arg6[%c0_26, %c0_27, %c0_28, %c0_29] : memref<1x1x1x128xf32, #tpu.memory_space<vmem>>, vector<1x1x1x128xf32>
      %28 = vector.shape_cast %27 : vector<1x1x1x128xf32> to vector<1x128xf32>
      %29 = vector.shape_cast %26 : vector<1x128xf32> to vector<1x1x1x128xf32>
      tpu.vector_store %arg6[%c0_26, %c0_27, %c0_28, %c0_29], %29 {strides = array<i32>} : memref<1x1x1x128xf32, #tpu.memory_space<vmem>>, vector<1x1x1x128xf32>,
      %cst_30 = arith.constant 0.000000e+00 : f32
      %30 = vector.broadcast %cst_30 : f32 to vector<1x128xf32>
      %c0_31 = arith.constant 0 : index
      %c0_32 = arith.constant 0 : index
      %c0_33 = arith.constant 0 : index
      %c0_34 = arith.constant 0 : index
      %31 = vector.load %arg7[%c0_31, %c0_32, %c0_33, %c0_34] : memref<1x1x1x128xf32, #tpu.memory_space<vmem>>, vector<1x1x1x128xf32>
      %32 = vector.shape_cast %31 : vector<1x1x1x128xf32> to vector<1x128xf32>
      %33 = vector.shape_cast %30 : vector<1x128xf32> to vector<1x1x1x128xf32>
      tpu.vector_store %arg7[%c0_31, %c0_32, %c0_33, %c0_34], %33 {strides = array<i32>} : memref<1x1x1x128xf32, #tpu.memory_space<vmem>>, vector<1x1x1x128xf32>,
    } else {
    }
    %c0 = arith.constant 0 : index
    %c0_1 = arith.constant 0 : index
    %c0_2 = arith.constant 0 : index
    %3 = vector.load %arg3[%c0, %c0_1, %c0_2] : memref<1x4x128xf32, #tpu.memory_space<vmem>>, vector<1x4x128xf32>
    %4 = vector.shape_cast %3 : vector<1x4x128xf32> to vector<4x128xf32>
    %c0_3 = arith.constant 0 : index
    %c0_4 = arith.constant 0 : index
    %c0_5 = arith.constant 0 : index
    %5 = vector.load %arg4[%c0_3, %c0_4, %c0_5] : memref<1x4x128xf32, #tpu.memory_space<vmem>>, vector<1x4x128xf32>
    %6 = vector.shape_cast %5 : vector<1x4x128xf32> to vector<4x128xf32>
    %c0_6 = arith.constant 0 : index
    %c0_7 = arith.constant 0 : index
    %c0_8 = arith.constant 0 : index
    %7 = vector.load %arg5[%c0_6, %c0_7, %c0_8] : memref<1x1x128xf32, #tpu.memory_space<vmem>>, vector<1x1x128xf32>
    %8 = vector.shape_cast %7 : vector<1x1x128xf32> to vector<1x128xf32>
    %9 = arith.subf %4, %6 : vector<4x128xf32>
    %10 = arith.mulf %9, %9 : vector<4x128xf32>
    %cst = arith.constant dense<0.000000e+00> : vector<128xf32>
    %11 = vector.multi_reduction <add>, %10, %cst [0] : vector<4x128xf32> to vector<128xf32>
    %12 = vector.shape_cast %11 : vector<128xf32> to vector<1x128xf32>
    %c0_9 = arith.constant 0 : index
    %c0_10 = arith.constant 0 : index
    %c0_11 = arith.constant 0 : index
    %c0_12 = arith.constant 0 : index
    %13 = vector.load %arg6[%c0_9, %c0_10, %c0_11, %c0_12] : memref<1x1x1x128xf32, #tpu.memory_space<vmem>>, vector<1x1x1x128xf32>
    %14 = vector.shape_cast %13 : vector<1x1x1x128xf32> to vector<1x128xf32>
    %15 = arith.mulf %12, %8 : vector<1x128xf32>
    %16 = arith.addf %14, %15 : vector<1x128xf32>
    %c0_13 = arith.constant 0 : index
    %c0_14 = arith.constant 0 : index
    %c0_15 = arith.constant 0 : index
    %c0_16 = arith.constant 0 : index
    %17 = vector.load %arg6[%c0_13, %c0_14, %c0_15, %c0_16] : memref<1x1x1x128xf32, #tpu.memory_space<vmem>>, vector<1x1x1x128xf32>
    %18 = vector.shape_cast %17 : vector<1x1x1x128xf32> to vector<1x128xf32>
    %19 = vector.shape_cast %16 : vector<1x128xf32> to vector<1x1x1x128xf32>
    tpu.vector_store %arg6[%c0_13, %c0_14, %c0_15, %c0_16], %19 {strides = array<i32>} : memref<1x1x1x128xf32, #tpu.memory_space<vmem>>, vector<1x1x1x128xf32>,
    %c0_17 = arith.constant 0 : index
    %c0_18 = arith.constant 0 : index
    %c0_19 = arith.constant 0 : index
    %c0_20 = arith.constant 0 : index
    %20 = vector.load %arg7[%c0_17, %c0_18, %c0_19, %c0_20] : memref<1x1x1x128xf32, #tpu.memory_space<vmem>>, vector<1x1x1x128xf32>
    %21 = vector.shape_cast %20 : vector<1x1x1x128xf32> to vector<1x128xf32>
    %22 = arith.addf %21, %8 : vector<1x128xf32>
    %c0_21 = arith.constant 0 : index
    %c0_22 = arith.constant 0 : index
    %c0_23 = arith.constant 0 : index
    %c0_24 = arith.constant 0 : index
    %23 = vector.load %arg7[%c0_21, %c0_22, %c0_23, %c0_24] : memref<1x1x1x128xf32, #tpu.memory_space<vmem>>, vector<1x1x1x128xf32>
    %24 = vector.shape_cast %23 : vector<1x1x1x128xf32> to vector<1x128xf32>
    %25 = vector.shape_cast %22 : vector<1x128xf32> to vector<1x1x1x128xf32>
    tpu.vector_store %arg7[%c0_21, %c0_22, %c0_23, %c0_24], %25 {strides = array<i32>} : memref<1x1x1x128xf32, #tpu.memory_space<vmem>>, vector<1x1x1x128xf32>,
    return
  }
  func.func @transform_0(%arg0: i32, %arg1: i32, %arg2: i32) -> (i32, i32, i32) {
    %c1_i32 = arith.constant 1 : i32
    %0 = arith.muli %arg0, %c1_i32 : i32
    %1 = arith.addi %0, %arg2 : i32
    %c0_i32 = arith.constant 0 : i32
    %c0_i32_0 = arith.constant 0 : i32
    return %arg1, %c0_i32, %1 : i32, i32, i32
  }
  func.func @transform_1(%arg0: i32, %arg1: i32, %arg2: i32) -> (i32, i32, i32) {
    %c1_i32 = arith.constant 1 : i32
    %0 = arith.muli %arg0, %c1_i32 : i32
    %1 = arith.addi %0, %arg2 : i32
    %c0_i32 = arith.constant 0 : i32
    %c0_i32_0 = arith.constant 0 : i32
    return %arg1, %c0_i32, %1 : i32, i32, i32
  }
  func.func @transform_2(%arg0: i32, %arg1: i32, %arg2: i32) -> (i32, i32, i32) {
    %c1_i32 = arith.constant 1 : i32
    %0 = arith.muli %arg0, %c1_i32 : i32
    %1 = arith.addi %0, %arg2 : i32
    %c0_i32 = arith.constant 0 : i32
    %c0_i32_0 = arith.constant 0 : i32
    return %arg1, %c0_i32, %1 : i32, i32, i32
  }
  func.func @transform_3(%arg0: i32, %arg1: i32, %arg2: i32) -> (i32, i32, i32, i32) {
    %c0_i32 = arith.constant 0 : i32
    %c0_i32_0 = arith.constant 0 : i32
    %c0_i32_1 = arith.constant 0 : i32
    return %arg0, %arg1, %c0_i32, %c0_i32_0 : i32, i32, i32, i32
  }
  func.func @transform_4(%arg0: i32, %arg1: i32, %arg2: i32) -> (i32, i32, i32, i32) {
    %c0_i32 = arith.constant 0 : i32
    %c0_i32_0 = arith.constant 0 : i32
    %c0_i32_1 = arith.constant 0 : i32
    return %arg0, %arg1, %c0_i32, %c0_i32_0 : i32, i32, i32, i32
  }
}

</mosaic_0001>

<bundles_post_ra>
// kernel: reconstruction_loss.1
= control target key start
LH: loop header
LB: loop body
LE: loop exit
PB: predicated region body
PF: predicated region fallthrough
CT: control target
= control target key end

     0   :  { %s637_s15 = smov 0   ;;  %s639_s16 = smov 0   ;;  %s697_s0 = inlined_call_operand.vmem [shape: f32[2,4,256], index: 0, kind: input, shape index: {}]   ;;  %s698_s1 = inlined_call_operand.vmem [shape: f32[2,4,256], index: 1, kind: input, shape index: {}]   ;;  %s699_s2 = inlined_call_operand.vmem [shape: f32[2,1,256], index: 2, kind: input, shape index: {}]   ;;  %s700_s3 = inlined_call_operand.vmem [shape: f32[2,2,1,128], index: 3, kind: output, shape index: {0}]   ;;  %s701_s4 = inlined_call_operand.vmem [shape: f32[2,2,1,128], index: 4, kind: output, shape index: {1}]  }
   0x1   :  { %s641_s17 = smov 0   ;;  %s643_s18 = smov 0  }
   0x2   :  { %s645_s19 = smov 0  }
   0x3 LB: > { %s30_s20 = sadd.s32 1, %s601_s17  ;;  %s34_s21 = sadd.s32 1, %s605_s18  ;;  %s609_s19 = sphi %s645_s19, %s15_s19   ;;  %s605_s18 = sphi %s643_s18, %s705_s18   ;;  %s601_s17 = sphi %s641_s17, %s704_s17   ;;  %s597_s16 = sphi %s639_s16, %s703_s16   ;;  %s593_s15 = sphi %s637_s15, %s702_s15  }
   0x4   : > { %p32_p0 = scmp.ge.s32.totalorder %s30_s20, 2  ;;  %p520_p1 = scmp.ge.s32.totalorder %s609_s19, 1 }
   0x5   : > { %p234_p2 = scmp.lt.s32.totalorder %s609_s19, 5 }
   0x6   : > { %s707_s20 = smov (%p32_p0, %s30_s20), 0  ;;  %s709_s21 = smov (!%p32_p0, %s34_s21), %s605_s18 }
   0x7   : > { %p235_p3 = pnand %p520_p1, %p234_p2  ;;  %p36_p4 = scmp.ge.s32.totalorder %s709_s21, 2 }
   0x8   : > { %p291_p5 = scmp.lt.s32.totalorder (!%p235_p3), %s593_s15, 1  ;;  %p293_p6 = scmp.lt.s32.totalorder (!%p235_p3), %s597_s16, 1 }
   0x9   : > { %s711_s21 = smov (%p36_p4, %s709_s21), 0  ;;  %238 = sbr.rel (%p235_p3) target bundleno = 43 (0x2b), region = 32 }
   0xe   : > { %s713_s15 = smov (!%p291_p5, %s593_s15), 1  ;;  %s715_s16 = smov (!%p293_p6, %s597_s16), 1  ;;  %v611_v2 = vmov 0.0   ;;  %vm344_vm0 = vcmask 1043456  }
   0xf   : > { %s521_s22 = sshll.u32 %s713_s15, 1  ;;  %s526_s24 = sshll.u32 %s715_s16, 1 }
  0x10   : > { %s296_s23 = sadd.s32 %s521_s22, %s715_s16  ;;  %s324_s26 = sadd.s32 %s526_s24, %s713_s15 }
  0x11   : > { %s522_s25 = sshll.u32 %s296_s23, 2  ;;  %s325_s9 = scalar_lea.vmem %s700_s3, %s324_s26 }
  0x12   : > { %s298_s29 = scalar_lea.vmem %s697_s0, %s522_s25  ;;  %s308_s6 = scalar_lea.vmem %s698_s1, %s522_s25  ;;  %337 = vst [vmem:[%s325_s9] sm:$0x1] %v611_v2 }
  0x13   : > { %v339_v0 = vld [vmem:[%s298_s29] sm:$0xf]  ;;  %s332_s12 = scalar_lea.vmem %s701_s4, %s324_s26  ;;  %s317_s15 = scalar_lea.vmem %s699_s2, %s296_s23 }
  0x14   : > { %v340_v1 = vld [vmem:[%s308_s6] sm:$0xf]  ;;  %338 = vst [vmem:[%s332_s12] sm:$0x1] %v611_v2 }
  0x15   : > { %v342_v3 = vsub.f32 %v339_v0, %v340_v1  ;;  %v341_v7 = vld [vmem:[%s317_s15] sm:$0x1] }
  0x17   : > { %v343_v4 = vmul.f32 %v342_v3, %v342_v3 }
  0x19   : > { %v345_v5 = vsel %vm344_vm0, %v343_v4, 0.0  ;;  %v352_v15 = vld [vmem:[%s325_s9] sm:$0x1] }
  0x1a   : > { %v346_v6 = vrot.slane %v345_v5, 4 }
  0x1b   : > { %v356_v9 = vld [vmem:[%s332_s12] sm:$0x1] }
  0x1c   : > { %v347_v8 = vadd.f32 %v346_v6, %v345_v5  ;;  %v357_v10 = vadd.f32 %v356_v9, %v341_v7 }
  0x1e   : > { %v348_v11 = vrot.slane %v347_v8, 2  ;;  %358 = vst [vmem:[%s332_s12] sm:$0x1] %v357_v10 }
  0x20   : > { %v349_v12 = vadd.f32 %v348_v11, %v347_v8 }
  0x22   : > { %v350_v13 = vrot.slane %v349_v12, 1 }
  0x24   : > { %v351_v14 = vadd.f32 %v350_v13, %v349_v12 }
  0x26   : > { %v353_v16 = vmul.f32 %v351_v14, %v341_v7 }
  0x28   : > { %v354_v17 = vadd.f32 %v353_v16, %v352_v15 }
  0x2a   : > { %355 = vst [vmem:[%s325_s9] sm:$0x1] %v354_v17 }
  0x2b PF: > { %s15_s19 = sadd.s32 1, %s609_s19   ;;  %s702_s15 = smov %s601_s17 }
  0x2c   : > { %p12_p7 = scmp.ge.s32.totalorder %s15_s19, 6   ;;  %s703_s16 = smov %s605_s18 }
  0x2d   : > { %s704_s17 = smov %s707_s20  ;;  %s705_s18 = smov %s711_s21 }
  0x2e   :  { %14 = sbr.rel (!%p12_p7) target bundleno = 3 (0x3), region = 84 }

</bundles_post_ra>
